<compile_context>
chip_gen: v7x
topology: tpu7x:2x2x1
jax: 0.10.0
libtpu: 0.0.40
codegen_flags: <defaults>
</compile_context>

<pallas_src>
import jax
import jax.numpy as jnp
from jax.experimental import pallas as pl
from jax.experimental.pallas import tpu as pltpu


def _make_kernel(num_classes: int, batch: int, block_rows: int, num_tiles: int):
    # Plain Python floats -> jaxpr literals (NOT captured device constants).
    inv_batch = 1.0 / float(batch)
    needs_row_mask = (num_tiles * block_rows) != batch

    def kernel(x_ref, o_ref, acc_ref):
        i = pl.program_id(0)

        @pl.when(i == 0)
        def _init():
            acc_ref[...] = jnp.zeros_like(acc_ref)

        x = x_ref[...].astype(jnp.float32)                 # [TB, C]

        # Row-wise stable exp; never materialize the normalized softmax probs.
        m = jnp.max(x, axis=1, keepdims=True)              # [TB, 1]
        e = jnp.exp(x - m)                                 # [TB, C]
        denom = jnp.sum(e, axis=1, keepdims=True)          # [TB, 1]

        col = jax.lax.broadcasted_iota(jnp.int32, x.shape, 1)
        tail_e = jnp.sum(jnp.where(col >= num_classes, e, 0.0),
                         axis=1, keepdims=True)            # [TB, 1]

        tail = tail_e / denom                              # == prob[:, nc:].sum(1)
        soft = jnp.where(tail == 0.0, 1e-6, 0.0)           # 1e-6 only where tail == 0
        term = -jnp.log(tail + soft)                       # [TB, 1]

        if needs_row_mask:  # only emitted when the last tile has padded rows
            row = (jax.lax.broadcasted_iota(jnp.int32, (block_rows, 1), 0)
                   + i * block_rows)
            term = jnp.where(row < batch, term, 0.0)

        acc_ref[...] += jnp.sum(term, axis=0, keepdims=True)

        @pl.when(i == pl.num_programs(0) - 1)
        def _finish():
            o_ref[...] = acc_ref[...] * inv_batch

    return kernel


def target_discrim_loss(logits: jnp.ndarray, num_classes: int = 31,
                        block_rows: int = 1024) -> jnp.ndarray:
    """logits: [B, C] with C > num_classes. Returns the scalar f32 loss."""
    B, C = logits.shape
    if B <= block_rows:
        tb = B                               # block == full dim: no (8, .) constraint
    else:
        tb = block_rows                      # multiple of 8 by construction
    assert tb == B or tb % 8 == 0, "block_rows must be a multiple of 8"
    num_tiles = pl.cdiv(B, tb)

    kernel = _make_kernel(num_classes, B, tb, num_tiles)

    out = pl.pallas_call(
        kernel,
        out_shape=jax.ShapeDtypeStruct((1, 1), jnp.float32),
        grid=(num_tiles,),
        in_specs=[pl.BlockSpec((tb, C), lambda i: (i, 0))],
        out_specs=pl.BlockSpec((1, 1), lambda i: (0, 0)),
        scratch_shapes=[pltpu.VMEM((1, 1), jnp.float32)],
        compiler_params=pltpu.CompilerParams(
            dimension_semantics=("arbitrary",)),   # serial accumulator over batch tiles
    )(logits)
    return out[0, 0]


def _reference(logits: jnp.ndarray, num_classes: int) -> jnp.ndarray:
    prob = jax.nn.softmax(logits.astype(jnp.float32), axis=1)
    tail = prob[:, num_classes:].sum(axis=1)
    soft = jnp.where(tail == 0.0, 1e-6, 0.0)
    return -jnp.mean(jnp.log(tail + soft))


if __name__ == "__main__":
    key = jax.random.PRNGKey(0)
    k1, k2 = jax.random.split(key)

    # Case 1: module defaults (num_classes=31 -> 62 total classes), single tile.
    nc1, b1, c1 = 31, 16, 62
    x1 = jax.random.normal(k1, (b1, c1), dtype=jnp.float32)
    loss1 = jax.block_until_ready(target_discrim_loss(x1, num_classes=nc1))
    ref1 = _reference(x1, nc1)
    assert jnp.allclose(loss1, ref1, rtol=1e-5, atol=1e-6), (loss1, ref1)

    # Case 2: multi-tile path with a remainder tile (B=40, TB=16 -> 3 tiles, 8 padded rows).
    nc2, b2, c2 = 4, 40, 8
    x2 = jax.random.normal(k2, (b2, c2), dtype=jnp.float32)
    loss2 = jax.block_until_ready(
        target_discrim_loss(x2, num_classes=nc2, block_rows=16))
    ref2 = _reference(x2, nc2)
    assert jnp.allclose(loss2, ref2, rtol=1e-5, atol=1e-6), (loss2, ref2)

    print("KERNEL_OK")
</pallas_src>

<mosaic_0001>
module attributes {stable_mosaic.version = 11 : i64} {
  func.func @kernel(%arg0: i32, %arg1: memref<16x62xf32, #tpu.memory_space<vmem>>, %arg2: memref<1x1xf32, #tpu.memory_space<vmem>>, %arg3: memref<1x1xf32, #tpu.memory_space<vmem>>) attributes {dimension_semantics = [#tpu.dimension_semantics<arbitrary>], iteration_bounds = array<i64: 1>, scalar_prefetch = 0 : i64, scratch_operands = 1 : i64, tpu.core_type = #tpu.core_type<tc>, window_params = [{transform_indices = @transform_0, window_bounds = array<i64: 16, 62>}, {pipeline_mode = #tpu.pipeline_mode<synchronous>, transform_indices = @transform_1, window_bounds = array<i64: 1, 1>}]} {
    %c0_i32 = arith.constant 0 : i32
    %0 = arith.cmpi eq, %arg0, %c0_i32 : i32
    %1 = arith.extui %0 : i1 to i32
    %c0_i32_0 = arith.constant 0 : i32
    %2 = arith.cmpi ne, %1, %c0_i32_0 : i32
    scf.if %2 {
      %cst_16 = arith.constant 0.000000e+00 : f32
      %36 = vector.broadcast %cst_16 : f32 to vector<1x1xf32>
      %c0_17 = arith.constant 0 : index
      %c0_18 = arith.constant 0 : index
      %37 = vector.load %arg3[%c0_17, %c0_18] : memref<1x1xf32, #tpu.memory_space<vmem>>, vector<1x1xf32>
      tpu.vector_store %arg3[%c0_17, %c0_18], %36 {strides = array<i32>} : memref<1x1xf32, #tpu.memory_space<vmem>>, vector<1x1xf32>,
    } else {
    }
    %c0 = arith.constant 0 : index
    %c0_1 = arith.constant 0 : index
    %3 = vector.load %arg1[%c0, %c0_1] : memref<16x62xf32, #tpu.memory_space<vmem>>, vector<16x62xf32>
    %cst = arith.constant dense<0xFF800000> : vector<16xf32>
    %4 = vector.multi_reduction <maximumf>, %3, %cst [1] : vector<16x62xf32> to vector<16xf32>
    %5 = vector.shape_cast %4 : vector<16xf32> to vector<16x1xf32>
    %6 = vector.broadcast %5 : vector<16x1xf32> to vector<16x62xf32>
    %7 = arith.subf %3, %6 : vector<16x62xf32>
    %8 = math.exp %7 : vector<16x62xf32>
    %cst_2 = arith.constant dense<0.000000e+00> : vector<16xf32>
    %9 = vector.multi_reduction <add>, %8, %cst_2 [1] : vector<16x62xf32> to vector<16xf32>
    %10 = vector.shape_cast %9 : vector<16xf32> to vector<16x1xf32>
    %11 = tpu.iota {dimensions = array<i32: 1>} : vector<16x62xi32>
    %c31_i32 = arith.constant 31 : i32
    %12 = vector.broadcast %c31_i32 : i32 to vector<16x62xi32>
    %13 = arith.cmpi sge, %11, %12 : vector<16x62xi32>
    %cst_3 = arith.constant 0.000000e+00 : f32
    %14 = vector.broadcast %cst_3 : f32 to vector<16x62xf32>
    %15 = arith.select %13, %8, %14 : vector<16x62xi1>, vector<16x62xf32>
    %cst_4 = arith.constant dense<0.000000e+00> : vector<16xf32>
    %16 = vector.multi_reduction <add>, %15, %cst_4 [1] : vector<16x62xf32> to vector<16xf32>
    %17 = vector.shape_cast %16 : vector<16xf32> to vector<16x1xf32>
    %18 = arith.divf %17, %10 : vector<16x1xf32>
    %cst_5 = arith.constant 0.000000e+00 : f32
    %19 = vector.broadcast %cst_5 : f32 to vector<16x1xf32>
    %20 = arith.cmpf oeq, %18, %19 : vector<16x1xf32>
    %cst_6 = arith.constant 9.99999997E-7 : f32
    %cst_7 = arith.constant 0.000000e+00 : f32
    %21 = vector.broadcast %cst_6 : f32 to vector<16x1xf32>
    %22 = vector.broadcast %cst_7 : f32 to vector<16x1xf32>
    %23 = arith.select %20, %21, %22 : vector<16x1xi1>, vector<16x1xf32>
    %24 = arith.addf %18, %23 : vector<16x1xf32>
    %25 = math.log %24 : vector<16x1xf32>
    %cst_8 = arith.constant 0.000000e+00 : f32
    %26 = vector.broadcast %cst_8 : f32 to vector<16x1xf32>
    %27 = arith.subf %26, %25 : vector<16x1xf32>
    %c0_9 = arith.constant 0 : index
    %c0_10 = arith.constant 0 : index
    %28 = vector.load %arg3[%c0_9, %c0_10] : memref<1x1xf32, #tpu.memory_space<vmem>>, vector<1x1xf32>
    %cst_11 = arith.constant dense<0.000000e+00> : vector<1xf32>
    %29 = vector.multi_reduction <add>, %27, %cst_11 [0] : vector<16x1xf32> to vector<1xf32>
    %30 = vector.shape_cast %29 : vector<1xf32> to vector<1x1xf32>
    %31 = arith.addf %28, %30 : vector<1x1xf32>
    %c0_12 = arith.constant 0 : index
    %c0_13 = arith.constant 0 : index
    %32 = vector.load %arg3[%c0_12, %c0_13] : memref<1x1xf32, #tpu.memory_space<vmem>>, vector<1x1xf32>
    tpu.vector_store %arg3[%c0_12, %c0_13], %31 {strides = array<i32>} : memref<1x1xf32, #tpu.memory_space<vmem>>, vector<1x1xf32>,
    %c0_i32_14 = arith.constant 0 : i32
    %33 = arith.cmpi eq, %arg0, %c0_i32_14 : i32
    %34 = arith.extui %33 : i1 to i32
    %c0_i32_15 = arith.constant 0 : i32
    %35 = arith.cmpi ne, %34, %c0_i32_15 : i32
    scf.if %35 {
      %c0_16 = arith.constant 0 : index
      %c0_17 = arith.constant 0 : index
      %36 = vector.load %arg3[%c0_16, %c0_17] : memref<1x1xf32, #tpu.memory_space<vmem>>, vector<1x1xf32>
      %cst_18 = arith.constant 6.250000e-02 : f32
      %37 = vector.broadcast %cst_18 : f32 to vector<1x1xf32>
      %38 = arith.mulf %36, %37 : vector<1x1xf32>
      %c0_19 = arith.constant 0 : index
      %c0_20 = arith.constant 0 : index
      %39 = vector.load %arg2[%c0_19, %c0_20] : memref<1x1xf32, #tpu.memory_space<vmem>>, vector<1x1xf32>
      tpu.vector_store %arg2[%c0_19, %c0_20], %38 {strides = array<i32>} : memref<1x1xf32, #tpu.memory_space<vmem>>, vector<1x1xf32>,
    } else {
    }
    return
  }
  func.func @transform_0(%arg0: i32) -> (i32, i32) {
    %c0_i32 = arith.constant 0 : i32
    %c0_i32_0 = arith.constant 0 : i32
    return %arg0, %c0_i32 : i32, i32
  }
  func.func @transform_1(%arg0: i32) -> (i32, i32) {
    %c0_i32 = arith.constant 0 : i32
    %c0_i32_0 = arith.constant 0 : i32
    %c0_i32_1 = arith.constant 0 : i32
    return %c0_i32, %c0_i32_0 : i32, i32
  }
}

</mosaic_0001>

<bundles_post_ra>
// kernel: tpu_custom_call.1
= control target key start
LH: loop header
LB: loop body
LE: loop exit
PB: predicated region body
PF: predicated region fallthrough
CT: control target
= control target key end

     0   :  { %6 = vsyncpa [#allocation4], 0  ;;  %s222_s0 = inlined_call_operand.hbm [shape: f32[16,62], index: 0, kind: input, shape index: {}]   ;;  %s223_s1 = inlined_call_operand.hbm [shape: f32[1,1], index: 1, kind: output, shape index: {}]  }
   0x1   :  { %7 = vsyncpa [#allocation5], 0  ;;  %s174_s6 = smov [#allocation3]   ;;  %s126_s10 = scalar_lea.hbm %s222_s0, 256 }
   0x2   :  { %s13_s7 = sshll.u32 %s174_s6, 4  ;;  %p127_p0 = scmp.ne.s32.totalorder %s222_s0, %s126_s10  ;;  %s14_s7 = int_to_ptr.vmem [resolvable:$true] %s13_s7 }
   0x3   :  { %p130_p1 = scmp.lt.u32.totalorder %s126_s10, %s222_s0 }
   0x5   :  { %p132_p2 = pnand %p130_p1, %p127_p0 }
   0x7   :  { %135 = shalt.err (!%p132_p2)
}
   0x8   :  { %s136_s15 = scalar_lea.vmem %s14_s7, 256  ;;  %p141_p4 = scmp.lt.s32.totalorder %s14_s7, %s14_s7 }
   0x9   :  { %p137_p3 = scmp.ne.s32.totalorder %s14_s7, %s136_s15  ;;  %p142_p5 = scmp.lt.s32.totalorder %s136_s15, %s136_s15 }
   0xb   :  { %p143_p6 = por %p142_p5, %p141_p4 }
   0xd   :  { %p144_p7 = pnand %p143_p6, %p137_p3 }
   0xf   :  { %147 = shalt.err (!%p144_p7)
}
  0x10   :  { %s175_s16 = smov 128   ;;  %s176_s17 = smov 8  }
  0x11   :  { %19 = dma.hbm_to_vmem [thread:$0]  %s222_s0, 256, %s14_s7, [#allocation4], %s175_s16, %s175_s16, %s176_s17  }
  0x12   :  { %170 = dma.done.wait [#allocation4], 256  }
  0x13   :  { %171 = vsyncadd [#allocation4], 4294967040  ;;  %vm31_vm0 = vcmask 506880   ;;  %v29_v0 = vld [vmem:[#allocation3] sm:$0xff]  ;;  %v30_v1 = vld [vmem:[#allocation3 + $0x8] sm:$0xff]  ;;  %v50_v9 = vlaneseq  ;;  %vm27_vm2 = vcmask 0  }
  0x14   :  { %v32_v2 = vsel %vm31_vm0, %v29_v0, -inf  ;;  %v35_v3 = vsel %vm31_vm0, %v30_v1, -inf  ;;  %v177_v20 = vmov 0.0   ;;  %s178_s0 = smov [#allocation6]  }
  0x15   :  { %33 = vmax.xlane.f32.xlu0 %v32_v2  ;;  %v51_v11 = vand.u32 127, %v50_v9  ;;  %28 = vst.msk [vmem:[#allocation2] sm:$0x1] %vm27_vm2, %v177_v20  ;;  %s100_s20 = sshll.u32 %s178_s0, 4  ;;  %s101_s20 = int_to_ptr.vmem [resolvable:$true] %s100_s20 }
  0x16   :  { %s148_s21 = scalar_lea.vmem %s101_s20, 16  ;;  %s152_s22 = scalar_lea.vmem %s101_s20, 32 }
  0x17   :  { %vm52_vm1 = vcmp.ge.s32.totalorder %v51_v11, 31  ;;  %p149_p8 = scmp.ne.s32.totalorder %s101_s20, %s148_s21  ;;  %p153_p9 = scmp.lt.s32.totalorder %s101_s20, %s101_s20 }
  0x18   :  { %p154_p10 = scmp.lt.s32.totalorder %s152_s22, %s148_s21 }
  0x19   :  { %36 = vmax.xlane.f32.xlu0 %v35_v3 }
  0x1a   :  { %p155_p11 = por %p154_p10, %p153_p9 }
  0x1c   :  { %v77_v45 = vld [vmem:[#allocation2] sm:$0x1]  ;;  %p156_p12 = pnand %p155_p11, %p149_p8 }
  0xa2   :  { %v34_v4 = vpop.xlane.xlu0 %33 }
  0xa3   :  { %v38_v5 = vsub.f32 %v29_v0, %v34_v4 }
  0xa5   :  { %v40_v6 = vmul.f32 1.442695, %v38_v5 }
  0xa6   :  { %v37_v7 = vpop.xlane.xlu0 %36 }
  0xa7   :  { %114 = vpow2.f32 %v40_v6  ;;  %v39_v8 = vsub.f32 %v30_v1, %v37_v7 }
  0xa9   :  { %v42_v10 = vmul.f32 1.442695, %v39_v8 }
  0xab   :  { %116 = vpow2.f32 %v42_v10 }
  0xb1   :  { %v115_v12 = vpop.eup %114 }
  0xb2   :  { %v44_v13 = vsel %vm31_vm0, %v115_v12, 0.0  ;;  %v53_v14 = vsel %vm52_vm1, %v115_v12, 0.0 }
  0xb3   :  { %45 = vadd.xlane.f32.xlu1 %v44_v13  ;;  %v55_v15 = vsel %vm31_vm0, %v53_v14, 0.0 }
  0xb4   :  { %56 = vadd.xlane.f32.xlu0 %v55_v15 }
  0xb5   :  { %v117_v16 = vpop.eup %116 }
  0xb6   :  { %v47_v17 = vsel %vm31_vm0, %v117_v16, 0.0  ;;  %v54_v18 = vsel %vm52_vm1, %v117_v16, 0.0 }
  0xb7   :  { %48 = vadd.xlane.f32.xlu1 %v47_v17  ;;  %v58_v19 = vsel %vm31_vm0, %v54_v18, 0.0 }
  0xbb   :  { %59 = vadd.xlane.f32.xlu1 %v58_v19 }
 0x140   :  { %v46_v21 = vpop.xlane.xlu1 %45 }
 0x141   :  { %118 = vrcp.f32 %v46_v21  ;;  %v57_v24 = vpop.xlane.xlu0 %56 }
 0x144   :  { %v49_v22 = vpop.xlane.xlu1 %48 }
 0x145   :  { %120 = vrcp.f32 %v49_v22 }
 0x148   :  { %v60_v28 = vpop.xlane.xlu1 %59 }
 0x14b   :  { %v119_v23 = vpop.eup %118 }
 0x14c   :  { %v62_v25 = vmul.f32 %v119_v23, %v57_v24 }
 0x14e   :  { %vm65_vm3 = vcmp.eq.f32.partialorder %v62_v25, 0.0 }
 0x14f   :  { %v121_v26 = vpop.eup %120  ;;  %v67_v27 = vsel %vm65_vm3, 1e-06, %v177_v20 }
 0x150   :  { %v69_v29 = vadd.f32 %v67_v27, %v62_v25  ;;  %v64_v30 = vmul.f32 %v121_v26, %v60_v28 }
 0x152   :  { %122 = vlog2.f32 %v69_v29  ;;  %vm66_vm4 = vcmp.eq.f32.partialorder %v64_v30, 0.0 }
 0x153   :  { %v68_v31 = vsel %vm66_vm4, 1e-06, %v177_v20 }
 0x154   :  { %v70_v32 = vadd.f32 %v68_v31, %v64_v30 }
 0x156   :  { %124 = vlog2.f32 %v70_v32 }
 0x15c   :  { %v123_v33 = vpop.eup %122 }
 0x15d   :  { %v72_v34 = vmul.f32 0.6931472, %v123_v33 }
 0x15f   :  { %v75_v37 = vsub.f32 0.0, %v72_v34 }
 0x160   :  { %v125_v35 = vpop.eup %124 }
 0x161   :  { %v74_v36 = vmul.f32 0.6931472, %v125_v35 }
 0x163   :  { %v76_v38 = vsub.f32 0.0, %v74_v36 }
 0x165   :  { %v78_v39 = vadd.f32 %v76_v38, %v75_v37 }
 0x167   :  { %v79_v40 = vrot.slane %v78_v39, 4 }
 0x169   :  { %v80_v41 = vadd.f32 %v79_v40, %v78_v39 }
 0x16b   :  { %v81_v42 = vrot.slane %v80_v41, 2 }
 0x16d   :  { %v82_v43 = vadd.f32 %v81_v42, %v80_v41 }
 0x16f   :  { %v83_v44 = vrot.slane %v82_v43, 1 }
 0x171   :  { %v84_v46 = vadd.f32 %v83_v44, %v82_v43 }
 0x173   :  { %v85_v47 = vadd.f32 %v84_v46, %v77_v45 }
 0x175   :  { %87 = vst.msk [vmem:[#allocation2] sm:$0x1] %vm27_vm2, %v85_v47 }
 0x17c   :  { %v91_v48 = vld [vmem:[#allocation2] sm:$0x1] }
 0x17d   :  { %v92_v49 = vmul.f32 0.0625, %v91_v48 }
 0x17f   :  { %93 = vst.msk [vmem:[#allocation6] sm:$0x1] %vm27_vm2, %v92_v49 }
 0x180   :  { %159 = shalt.err (!%p156_p12)
}
 0x181   :  { %s160_s25 = scalar_lea.hbm %s223_s1, 16 }
 0x182   :  { %p161_p13 = scmp.ne.s32.totalorder %s223_s1, %s160_s25  ;;  %p164_p0 = scmp.lt.u32.totalorder %s160_s25, %s223_s1 }
 0x184   :  { %p166_p1 = pnand %p164_p0, %p161_p13 }
 0x186   :  { %169 = shalt.err (!%p166_p1)
}
 0x187   :  { %103 = dma.vmem_to_hbm [thread:$0]  %s101_s20, 16, %s223_s1, [#allocation5]  }
 0x188   :  { %172 = dma.done.wait [#allocation5], 16  }
 0x189   :  { %173 = vsyncadd [#allocation5], 4294967280 }
 0x18a   :  { %107 = vsyncpa [#allocation4], 1 }
 0x18b   :  { %108 = vsyncpa [#allocation5], 1 }

</bundles_post_ra>
